<compile_context>
chip_gen: v7x
topology: tpu7x:2x2x1
jax: 0.10.0
libtpu: 0.0.40
codegen_flags: <defaults>
</compile_context>

<pallas_src>
import functools
import math

import jax
import jax.numpy as jnp
from jax.experimental import pallas as pl
from jax.experimental.pallas import tpu as pltpu


def _round_up(x, m):
    return ((x + m - 1) // m) * m


def _tpu_vmem_bytes():
    try:
        info = pltpu.get_tpu_info()
        return int(getattr(info, "vmem_capacity_bytes", 128 * 1024 * 1024))
    except Exception:
        return 128 * 1024 * 1024


def _tpu_num_cores():
    try:
        info = pltpu.get_tpu_info()
        for attr in ("num_cores", "core_count", "tensorcore_count", "num_tensorcores"):
            v = getattr(info, attr, None)
            if v:
                return int(v)
    except Exception:
        pass
    return 1


def _wsd_kernel(logits_ref, labels_ref, weights_ref, num_ref, den_ref, *,
                tile_d, chunk, n_tiles, tiles_per_super, d_valid, need_mask):
    """Accumulate per-lane partial sums of w2*probs*labels and w2*(probs+labels)."""
    s = pl.program_id(0)   # per-core "super" axis (parallel)
    t = pl.program_id(1)   # reduction axis (arbitrary)

    @pl.when(t == 0)
    def _():
        num_ref[...] = jnp.zeros_like(num_ref)
        den_ref[...] = jnp.zeros_like(den_ref)

    rows = logits_ref.shape[0]
    tile_idx = s * tiles_per_super + t
    col0 = tile_idx * tile_d

    if need_mask:
        lane = jax.lax.broadcasted_iota(jnp.int32, (rows, chunk), 1)
        tile_valid = tile_idx < n_tiles   # guards duplicated (clamped) tiles

    def body(c, carry):
        pn, pd = carry
        off = pl.multiple_of(c * chunk, chunk)
        lg = logits_ref[:, pl.ds(off, chunk)].astype(jnp.float32)
        lb = labels_ref[:, pl.ds(off, chunk)].astype(jnp.float32)
        w = weights_ref[:, pl.ds(off, chunk)].astype(jnp.float32)

        probs = 0.5 * jnp.tanh(0.5 * lg) + 0.5   # one EUP op per element
        w2 = w * w
        numer = w2 * probs * lb                  # w2 * intersection
        denom = w2 * (probs + lb)                # fused (w2*m1) + (w2*m2)

        if need_mask:
            mask = jnp.logical_and(tile_valid, (col0 + off + lane) < d_valid)
            numer = jnp.where(mask, numer, 0.0)  # where() blocks NaN from tail garbage
            denom = jnp.where(mask, denom, 0.0)

        for k in range(chunk // 128):            # VALU adds; cross-lane reduce deferred
            sl = slice(k * 128, (k + 1) * 128)
            pn = pn + numer[:, sl]
            pd = pd + denom[:, sl]
        return pn, pd

    trips = tile_d // chunk
    pn, pd = jax.lax.fori_loop(0, trips, body, (num_ref[0], den_ref[0]),
                               unroll=min(8, trips))
    num_ref[0] = pn
    den_ref[0] = pd


def weighted_soft_dice_loss(logits, labels, weights, *, max_tile_d=32768):
    """Equivalent of WeightedSoftDiceLoss().forward(logits, labels, weights)."""
    n = logits.shape[0]
    logits2d = jnp.reshape(logits, (n, -1))      # native dtype, metadata-only
    labels2d = jnp.reshape(labels, (n, -1))
    weights2d = jnp.reshape(weights, (n, -1))
    d = logits2d.shape[1]

    # ---- sublane folding (metadata-only reshape, no padding) ----------------
    r = 8 // math.gcd(n, 8)                      # power of two in {1,2,4,8}
    while r > 1 and (d % r != 0 or d // r < 128):
        r //= 2
    rows = n * r
    d2 = d // r

    lg = jnp.reshape(logits2d, (rows, d2))
    lb = jnp.reshape(labels2d, (rows, d2))
    wt = jnp.reshape(weights2d, (rows, d2))

    # ---- generation-aware block sizing --------------------------------------
    rows_pad = _round_up(rows, 8)
    vmem_phys = _tpu_vmem_bytes()
    budget = min(48 * 1024 * 1024, max(8 * 1024 * 1024, (vmem_phys * 3) // 8))
    itemsize_sum = (jnp.dtype(lg.dtype).itemsize + jnp.dtype(lb.dtype).itemsize
                    + jnp.dtype(wt.dtype).itemsize)
    per_col_bytes = 2 * rows_pad * itemsize_sum          # 3 inputs, double-buffered
    cap = max(128, (budget // per_col_bytes) // 128 * 128)
    tile_d = max(128, min(max_tile_d, cap, _round_up(d2, 128)))

    # chunk so per-chunk intermediates stay register-resident
    chunk = max(128, min(512, (8192 // rows_pad) // 128 * 128))
    while tile_d % chunk != 0:
        chunk //= 2

    n_tiles = pl.cdiv(d2, tile_d)
    n_super = 2 if (_tpu_num_cores() >= 2 and n_tiles >= 2) else 1
    tiles_per_super = pl.cdiv(n_tiles, n_super)
    need_mask = (d2 % tile_d != 0) or (n_super * tiles_per_super != n_tiles)

    kernel = functools.partial(
        _wsd_kernel, tile_d=tile_d, chunk=chunk, n_tiles=n_tiles,
        tiles_per_super=tiles_per_super, d_valid=d2, need_mask=need_mask)

    last_blk = n_tiles - 1
    in_spec = pl.BlockSpec(
        (rows, tile_d),
        lambda s, t: (0, jnp.minimum(s * tiles_per_super + t, last_blk)))
    out_spec = pl.BlockSpec((1, rows, 128), lambda s, t: (s, 0, 0))
    out_shape = jax.ShapeDtypeStruct((n_super, rows, 128), jnp.float32)

    vmem_limit = int(min((vmem_phys * 3) // 4, budget + 16 * 1024 * 1024))

    num_part, den_part = pl.pallas_call(
        kernel,
        out_shape=(out_shape, out_shape),
        grid_spec=pltpu.PrefetchScalarGridSpec(
            num_scalar_prefetch=0,
            grid=(n_super, tiles_per_super),
            in_specs=[in_spec, in_spec, in_spec],
            out_specs=(out_spec, out_spec),
        ),
        compiler_params=pltpu.CompilerParams(
            dimension_semantics=("parallel", "arbitrary"),
            vmem_limit_bytes=vmem_limit,
        ),
    )(lg, lb, wt)

    # ---- tiny epilogue: fold supers, lanes and sub-rows; final score --------
    num_row = jnp.sum(num_part, axis=(0, 2))                 # (rows,)
    den_row = jnp.sum(den_part, axis=(0, 2))
    num_s = jnp.sum(jnp.reshape(num_row, (n, r)), axis=1)    # per-sample sums
    den_s = jnp.sum(jnp.reshape(den_row, (n, r)), axis=1)
    score = 2.0 * (num_s + 1.0) / (den_s + 1.0)
    return 1.0 - jnp.sum(score) / n


def _reference_wsd(logits, labels, weights):
    n = labels.shape[0]
    probs = jax.nn.sigmoid(logits.astype(jnp.float32))
    w = weights.reshape(n, -1).astype(jnp.float32)
    w2 = w * w
    m1 = probs.reshape(n, -1)
    m2 = labels.reshape(n, -1).astype(jnp.float32)
    inter = m1 * m2
    score = 2.0 * ((w2 * inter).sum(1) + 1.0) / (
        (w2 * m1).sum(1) + (w2 * m2).sum(1) + 1.0)
    return 1.0 - score.sum() / n


if __name__ == "__main__":
    key = jax.random.PRNGKey(0)
    k1, k2, k3 = jax.random.split(key, 3)

    N, C, H, W = 2, 4, 16, 16
    logits = jax.random.normal(k1, (N, C, H, W), dtype=jnp.float32)
    labels = (jax.random.uniform(k2, (N, C, H, W)) > 0.5).astype(jnp.float32)
    weights = jax.random.uniform(k3, (N, C, H, W), dtype=jnp.float32)

    out = weighted_soft_dice_loss(logits, labels, weights)
    out = jax.block_until_ready(out)

    ref = _reference_wsd(logits, labels, weights)
    assert jnp.allclose(out, ref, atol=1e-4, rtol=1e-4), (out, ref)

    print("KERNEL_OK")
</pallas_src>

<mosaic_0001>
module attributes {stable_mosaic.version = 11 : i64} {
  func.func @_wsd_kernel(%arg0: i32, %arg1: i32, %arg2: memref<8x256xf32, #tpu.memory_space<vmem>>, %arg3: memref<8x256xf32, #tpu.memory_space<vmem>>, %arg4: memref<8x256xf32, #tpu.memory_space<vmem>>, %arg5: memref<1x8x128xf32, #tpu.memory_space<vmem>>, %arg6: memref<1x8x128xf32, #tpu.memory_space<vmem>>) attributes {dimension_semantics = [#tpu.dimension_semantics<parallel>, #tpu.dimension_semantics<arbitrary>], iteration_bounds = array<i64: 1, 1>, scalar_prefetch = 0 : i64, scratch_operands = 0 : i64, tpu.core_type = #tpu.core_type<tc>, window_params = [{transform_indices = @transform_0, window_bounds = array<i64: 8, 256>}, {transform_indices = @transform_1, window_bounds = array<i64: 8, 256>}, {transform_indices = @transform_2, window_bounds = array<i64: 8, 256>}, {transform_indices = @transform_3, window_bounds = array<i64: 1, 8, 128>}, {transform_indices = @transform_4, window_bounds = array<i64: 1, 8, 128>}]} {
    %c0_i32 = arith.constant 0 : i32
    %0 = arith.cmpi eq, %arg1, %c0_i32 : i32
    %1 = arith.extui %0 : i1 to i32
    %c0_i32_0 = arith.constant 0 : i32
    %2 = arith.cmpi ne, %1, %c0_i32_0 : i32
    scf.if %2 {
      %cst_18 = arith.constant 0.000000e+00 : f32
      %41 = vector.broadcast %cst_18 : f32 to vector<1x8x128xf32>
      %c0_19 = arith.constant 0 : index
      %c0_20 = arith.constant 0 : index
      %c0_21 = arith.constant 0 : index
      %42 = vector.load %arg5[%c0_19, %c0_20, %c0_21] : memref<1x8x128xf32, #tpu.memory_space<vmem>>, vector<1x8x128xf32>
      tpu.vector_store %arg5[%c0_19, %c0_20, %c0_21], %41 {strides = array<i32>} : memref<1x8x128xf32, #tpu.memory_space<vmem>>, vector<1x8x128xf32>,
      %cst_22 = arith.constant 0.000000e+00 : f32
      %43 = vector.broadcast %cst_22 : f32 to vector<1x8x128xf32>
      %c0_23 = arith.constant 0 : index
      %c0_24 = arith.constant 0 : index
      %c0_25 = arith.constant 0 : index
      %44 = vector.load %arg6[%c0_23, %c0_24, %c0_25] : memref<1x8x128xf32, #tpu.memory_space<vmem>>, vector<1x8x128xf32>
      tpu.vector_store %arg6[%c0_23, %c0_24, %c0_25], %43 {strides = array<i32>} : memref<1x8x128xf32, #tpu.memory_space<vmem>>, vector<1x8x128xf32>,
    } else {
    }
    %c0 = arith.constant 0 : index
    %c0_1 = arith.constant 0 : index
    %c0_2 = arith.constant 0 : index
    %3 = vector.load %arg5[%c0, %c0_1, %c0_2] : memref<1x8x128xf32, #tpu.memory_space<vmem>>, vector<1x8x128xf32>
    %4 = vector.shape_cast %3 : vector<1x8x128xf32> to vector<8x128xf32>
    %c0_3 = arith.constant 0 : index
    %c0_4 = arith.constant 0 : index
    %c0_5 = arith.constant 0 : index
    %5 = vector.load %arg6[%c0_3, %c0_4, %c0_5] : memref<1x8x128xf32, #tpu.memory_space<vmem>>, vector<1x8x128xf32>
    %6 = vector.shape_cast %5 : vector<1x8x128xf32> to vector<8x128xf32>
    %c0_i32_6 = arith.constant 0 : i32
    %c256_i32 = arith.constant 256 : i32
    %7 = arith.muli %c0_i32_6, %c256_i32 : i32
    %8 = tpu.assume_multiple %7, 256 : i32
    %c0_7 = arith.constant 0 : index
    %9 = arith.index_cast %8 : i32 to index
    %10 = vector.load %arg2[%c0_7, %9] : memref<8x256xf32, #tpu.memory_space<vmem>>, vector<8x256xf32>
    %c0_8 = arith.constant 0 : index
    %11 = arith.index_cast %8 : i32 to index
    %12 = vector.load %arg3[%c0_8, %11] : memref<8x256xf32, #tpu.memory_space<vmem>>, vector<8x256xf32>
    %c0_9 = arith.constant 0 : index
    %13 = arith.index_cast %8 : i32 to index
    %14 = vector.load %arg4[%c0_9, %13] : memref<8x256xf32, #tpu.memory_space<vmem>>, vector<8x256xf32>
    %cst = arith.constant 5.000000e-01 : f32
    %15 = vector.broadcast %cst : f32 to vector<8x256xf32>
    %16 = arith.mulf %15, %10 : vector<8x256xf32>
    %17 = math.tanh %16 : vector<8x256xf32>
    %cst_10 = arith.constant 5.000000e-01 : f32
    %18 = vector.broadcast %cst_10 : f32 to vector<8x256xf32>
    %19 = arith.mulf %18, %17 : vector<8x256xf32>
    %cst_11 = arith.constant 5.000000e-01 : f32
    %20 = vector.broadcast %cst_11 : f32 to vector<8x256xf32>
    %21 = arith.addf %19, %20 : vector<8x256xf32>
    %22 = arith.mulf %14, %14 : vector<8x256xf32>
    %23 = arith.mulf %22, %21 : vector<8x256xf32>
    %24 = arith.mulf %23, %12 : vector<8x256xf32>
    %25 = arith.addf %21, %12 : vector<8x256xf32>
    %26 = arith.mulf %22, %25 : vector<8x256xf32>
    %27 = vector.extract_strided_slice %24 {offsets = [0, 0], sizes = [8, 128], strides = [1, 1]} : vector<8x256xf32> to vector<8x128xf32>
    %28 = arith.addf %4, %27 : vector<8x128xf32>
    %29 = vector.extract_strided_slice %26 {offsets = [0, 0], sizes = [8, 128], strides = [1, 1]} : vector<8x256xf32> to vector<8x128xf32>
    %30 = arith.addf %6, %29 : vector<8x128xf32>
    %31 = vector.extract_strided_slice %24 {offsets = [0, 128], sizes = [8, 128], strides = [1, 1]} : vector<8x256xf32> to vector<8x128xf32>
    %32 = arith.addf %28, %31 : vector<8x128xf32>
    %33 = vector.extract_strided_slice %26 {offsets = [0, 128], sizes = [8, 128], strides = [1, 1]} : vector<8x256xf32> to vector<8x128xf32>
    %34 = arith.addf %30, %33 : vector<8x128xf32>
    %c1_i32 = arith.constant 1 : i32
    %c0_12 = arith.constant 0 : index
    %c0_13 = arith.constant 0 : index
    %c0_14 = arith.constant 0 : index
    %35 = vector.load %arg5[%c0_12, %c0_13, %c0_14] : memref<1x8x128xf32, #tpu.memory_space<vmem>>, vector<1x8x128xf32>
    %36 = vector.shape_cast %35 : vector<1x8x128xf32> to vector<8x128xf32>
    %37 = vector.shape_cast %32 : vector<8x128xf32> to vector<1x8x128xf32>
    tpu.vector_store %arg5[%c0_12, %c0_13, %c0_14], %37 {strides = array<i32>} : memref<1x8x128xf32, #tpu.memory_space<vmem>>, vector<1x8x128xf32>,
    %c0_15 = arith.constant 0 : index
    %c0_16 = arith.constant 0 : index
    %c0_17 = arith.constant 0 : index
    %38 = vector.load %arg6[%c0_15, %c0_16, %c0_17] : memref<1x8x128xf32, #tpu.memory_space<vmem>>, vector<1x8x128xf32>
    %39 = vector.shape_cast %38 : vector<1x8x128xf32> to vector<8x128xf32>
    %40 = vector.shape_cast %34 : vector<8x128xf32> to vector<1x8x128xf32>
    tpu.vector_store %arg6[%c0_15, %c0_16, %c0_17], %40 {strides = array<i32>} : memref<1x8x128xf32, #tpu.memory_space<vmem>>, vector<1x8x128xf32>,
    return
  }
  func.func @transform_0(%arg0: i32, %arg1: i32) -> (i32, i32) {
    %c1_i32 = arith.constant 1 : i32
    %0 = arith.muli %arg0, %c1_i32 : i32
    %1 = arith.addi %0, %arg1 : i32
    %c0_i32 = arith.constant 0 : i32
    %2 = arith.minsi %1, %c0_i32 : i32
    %c0_i32_0 = arith.constant 0 : i32
    %c0_i32_1 = arith.constant 0 : i32
    return %c0_i32_0, %2 : i32, i32
  }
  func.func @transform_1(%arg0: i32, %arg1: i32) -> (i32, i32) {
    %c1_i32 = arith.constant 1 : i32
    %0 = arith.muli %arg0, %c1_i32 : i32
    %1 = arith.addi %0, %arg1 : i32
    %c0_i32 = arith.constant 0 : i32
    %2 = arith.minsi %1, %c0_i32 : i32
    %c0_i32_0 = arith.constant 0 : i32
    %c0_i32_1 = arith.constant 0 : i32
    return %c0_i32_0, %2 : i32, i32
  }
  func.func @transform_2(%arg0: i32, %arg1: i32) -> (i32, i32) {
    %c1_i32 = arith.constant 1 : i32
    %0 = arith.muli %arg0, %c1_i32 : i32
    %1 = arith.addi %0, %arg1 : i32
    %c0_i32 = arith.constant 0 : i32
    %2 = arith.minsi %1, %c0_i32 : i32
    %c0_i32_0 = arith.constant 0 : i32
    %c0_i32_1 = arith.constant 0 : i32
    return %c0_i32_0, %2 : i32, i32
  }
  func.func @transform_3(%arg0: i32, %arg1: i32) -> (i32, i32, i32) {
    %c0_i32 = arith.constant 0 : i32
    %c0_i32_0 = arith.constant 0 : i32
    %c0_i32_1 = arith.constant 0 : i32
    return %arg0, %c0_i32, %c0_i32_0 : i32, i32, i32
  }
  func.func @transform_4(%arg0: i32, %arg1: i32) -> (i32, i32, i32) {
    %c0_i32 = arith.constant 0 : i32
    %c0_i32_0 = arith.constant 0 : i32
    %c0_i32_1 = arith.constant 0 : i32
    return %arg0, %c0_i32, %c0_i32_0 : i32, i32, i32
  }
}

</mosaic_0001>

<bundles_post_ra>
// kernel: tpu_custom_call.1
= control target key start
LH: loop header
LB: loop body
LE: loop exit
PB: predicated region body
PF: predicated region fallthrough
CT: control target
= control target key end

     0   :  { %10 = vsyncpa [#allocation3], 0  ;;  %s375_s0 = inlined_call_operand.hbm [shape: f32[8,256], index: 0, kind: input, shape index: {}]   ;;  %s376_s1 = inlined_call_operand.hbm [shape: f32[8,256], index: 1, kind: input, shape index: {}]   ;;  %s377_s2 = inlined_call_operand.hbm [shape: f32[8,256], index: 2, kind: input, shape index: {}]   ;;  %s378_s3 = inlined_call_operand.hbm [shape: f32[1,8,128], index: 3, kind: output, shape index: {0}]   ;;  %s379_s4 = inlined_call_operand.hbm [shape: f32[1,8,128], index: 4, kind: output, shape index: {1}]  }
   0x1   :  { %11 = vsyncpa [#allocation6], 0 }
   0x2   :  { %12 = vsyncpa [#allocation4], 0 }
   0x3   :  { %13 = vsyncpa [#allocation10], 0  ;;  %s285_s15 = smov [#allocation5]   ;;  %s286_s17 = smov [#allocation2]  }
   0x4   :  { %s42_s16 = sshll.u32 %s285_s15, 4  ;;  %s26_s18 = sshll.u32 %s286_s17, 4  ;;  %s43_s16 = int_to_ptr.vmem [resolvable:$true] %s42_s16  ;;  %s27_s18 = int_to_ptr.vmem [resolvable:$true] %s26_s18 }
   0x5   :  { %s167_s21 = scalar_lea.hbm %s376_s1, 256 }
   0x6   :  { %p168_p0 = scmp.ne.s32.totalorder %s376_s1, %s167_s21  ;;  %p171_p1 = scmp.lt.u32.totalorder %s167_s21, %s376_s1 }
   0x8   :  { %p173_p2 = pnand %p171_p1, %p168_p0 }
   0xa   :  { %176 = shalt.err (!%p173_p2)
}
   0xb   :  { %s177_s26 = scalar_lea.vmem %s43_s16, 256  ;;  %p182_p4 = scmp.lt.s32.totalorder %s43_s16, %s43_s16 }
   0xc   :  { %p178_p3 = scmp.ne.s32.totalorder %s43_s16, %s177_s26  ;;  %p183_p5 = scmp.lt.s32.totalorder %s177_s26, %s177_s26 }
   0xe   :  { %p184_p6 = por %p183_p5, %p182_p4 }
  0x10   :  { %p185_p7 = pnand %p184_p6, %p178_p3 }
  0x12   :  { %188 = shalt.err (!%p185_p7)
}
  0x13   :  { %45 = dma.hbm_to_vmem [thread:$0]  %s376_s1, 256, %s43_s16, [#allocation6]  }
  0x14   :  { %s189_s5 = scalar_lea.hbm %s375_s0, 256 }
  0x15   :  { %p190_p8 = scmp.ne.s32.totalorder %s375_s0, %s189_s5  ;;  %p193_p9 = scmp.lt.u32.totalorder %s189_s5, %s375_s0 }
  0x17   :  { %p195_p10 = pnand %p193_p9, %p190_p8 }
  0x19   :  { %198 = shalt.err (!%p195_p10)
}
  0x1a   :  { %s199_s10 = scalar_lea.vmem %s27_s18, 256  ;;  %p204_p12 = scmp.lt.s32.totalorder %s27_s18, %s27_s18 }
  0x1b   :  { %p200_p11 = scmp.ne.s32.totalorder %s27_s18, %s199_s10  ;;  %p205_p13 = scmp.lt.s32.totalorder %s199_s10, %s199_s10 }
  0x1d   :  { %p206_p0 = por %p205_p13, %p204_p12 }
  0x1f   :  { %p207_p1 = pnand %p206_p0, %p200_p11 }
  0x21   :  { %210 = shalt.err (!%p207_p1)
}
  0x22   :  { %29 = dma.hbm_to_vmem [thread:$0]  %s375_s0, 256, %s27_s18, [#allocation3]  }
  0x23   :  { %s287_s12 = smov [#allocation7]   ;;  %s211_s16 = scalar_lea.hbm %s377_s2, 256 }
  0x24   :  { %s58_s13 = sshll.u32 %s287_s12, 4  ;;  %p212_p2 = scmp.ne.s32.totalorder %s377_s2, %s211_s16  ;;  %s59_s13 = int_to_ptr.vmem [resolvable:$true] %s58_s13 }
  0x25   :  { %p215_p3 = scmp.lt.u32.totalorder %s211_s16, %s377_s2 }
  0x27   :  { %p217_p4 = pnand %p215_p3, %p212_p2 }
  0x29   :  { %220 = shalt.err (!%p217_p4)
}
  0x2a   :  { %s221_s22 = scalar_lea.vmem %s59_s13, 256  ;;  %p226_p6 = scmp.lt.s32.totalorder %s59_s13, %s59_s13 }
  0x2b   :  { %p222_p5 = scmp.ne.s32.totalorder %s59_s13, %s221_s22  ;;  %p227_p7 = scmp.lt.s32.totalorder %s221_s22, %s221_s22 }
  0x2d   :  { %p228_p8 = por %p227_p7, %p226_p6 }
  0x2f   :  { %p229_p9 = pnand %p228_p8, %p222_p5 }
  0x31   :  { %232 = shalt.err (!%p229_p9)
}
  0x32   :  { %61 = dma.hbm_to_vmem [thread:$0]  %s377_s2, 256, %s59_s13, [#allocation6]  }
  0x33   :  { %277 = dma.done.wait [#allocation3], 256  }
  0x34   :  { %278 = vsyncadd [#allocation3], 4294967040 }
  0x35   :  { %279 = dma.done.wait [#allocation6], 512  }
  0x36   :  { %280 = vsyncadd [#allocation6], 4294966784  ;;  %v91_v0 = vld [vmem:[#allocation2] sm:$0xff]  ;;  %v92_v1 = vld [vmem:[#allocation2 + $0x8] sm:$0xff]  ;;  %s288_s2 = smov [#allocation8]   ;;  %s289_s24 = smov [#allocation9]  }
  0x37   :  { %v97_v2 = vmul.f32 0.5, %v91_v0  ;;  %v98_v3 = vmul.f32 0.5, %v92_v1  ;;  %v95_v4 = vld [vmem:[#allocation7] sm:$0xff]  ;;  %v96_v5 = vld [vmem:[#allocation7 + $0x8] sm:$0xff]  ;;  %v93_v10 = vld [vmem:[#allocation5] sm:$0xff]  ;;  %s127_s23 = sshll.u32 %s288_s2, 4  ;;  %s128_s23 = int_to_ptr.vmem [resolvable:$true] %s127_s23 }
  0x38   :  { %v105_v9 = vmul.f32 %v95_v4, %v95_v4  ;;  %v106_v12 = vmul.f32 %v96_v5, %v96_v5  ;;  %v94_v13 = vld [vmem:[#allocation5 + $0x8] sm:$0xff]  ;;  %s137_s25 = sshll.u32 %s289_s24, 4  ;;  %s233_s26 = scalar_lea.vmem %s128_s23, 128  ;;  %s138_s25 = int_to_ptr.vmem [resolvable:$true] %s137_s25 }
  0x39   :  { %163 = vtanh.f32 %v97_v2  ;;  %p234_p10 = scmp.ne.s32.totalorder %s128_s23, %s233_s26  ;;  %p238_p11 = scmp.lt.s32.totalorder %s128_s23, %s128_s23 }
  0x3a   :  { %165 = vtanh.f32 %v98_v3  ;;  %p239_p12 = scmp.lt.s32.totalorder %s233_s26, %s233_s26 }
  0x3c   :  { %p240_p13 = por %p239_p12, %p238_p11 }
  0x3e   :  { %p241_p0 = pnand %p240_p13, %p234_p10 }
  0x43   :  { %v164_v6 = vpop.eup %163 }
  0x44   :  { %v166_v7 = vpop.eup %165  ;;  %v101_v8 = vmul.f32 0.5, %v164_v6 }
  0x45   :  { %v102_v11 = vmul.f32 0.5, %v166_v7 }
  0x46   :  { %v103_v14 = vadd.f32 0.5, %v101_v8 }
  0x47   :  { %v104_v15 = vadd.f32 0.5, %v102_v11 }
  0x48   :  { %v107_v16 = vmul.f32 %v105_v9, %v103_v14  ;;  %v111_v17 = vadd.f32 %v103_v14, %v93_v10 }
  0x49   :  { %v108_v18 = vmul.f32 %v106_v12, %v104_v15  ;;  %v112_v19 = vadd.f32 %v104_v15, %v94_v13 }
  0x4a   :  { %v109_v20 = vmul.f32 %v107_v16, %v93_v10  ;;  %v113_v21 = vmul.f32 %v111_v17, %v105_v9 }
  0x4b   :  { %v110_v22 = vmul.f32 %v108_v18, %v94_v13  ;;  %v114_v23 = vmul.f32 %v112_v19, %v106_v12 }
  0x4d   :  { %v117_v24 = vadd.f32 %v110_v22, %v109_v20  ;;  %v118_v25 = vadd.f32 %v114_v23, %v113_v21 }
  0x4f   :  { %119 = vst [vmem:[#allocation8] sm:$0xff] %v117_v24  ;;  %120 = vst [vmem:[#allocation9] sm:$0xff] %v118_v25 }
  0x50   :  { %244 = shalt.err (!%p241_p0)
}
  0x51   :  { %s245_s29 = scalar_lea.hbm %s378_s3, 128 }
  0x52   :  { %p246_p1 = scmp.ne.s32.totalorder %s378_s3, %s245_s29  ;;  %p249_p2 = scmp.lt.u32.totalorder %s245_s29, %s378_s3 }
  0x54   :  { %p251_p3 = pnand %p249_p2, %p246_p1 }
  0x56   :  { %254 = shalt.err (!%p251_p3)
}
  0x57   :  { %130 = dma.vmem_to_hbm [thread:$0]  %s128_s23, 128, %s378_s3, [#allocation4]  }
  0x58   :  { %s255_s10 = scalar_lea.vmem %s138_s25, 128  ;;  %p260_p5 = scmp.lt.s32.totalorder %s138_s25, %s138_s25 }
  0x59   :  { %p256_p4 = scmp.ne.s32.totalorder %s138_s25, %s255_s10  ;;  %p261_p6 = scmp.lt.s32.totalorder %s255_s10, %s255_s10 }
  0x5b   :  { %p262_p7 = por %p261_p6, %p260_p5 }
  0x5d   :  { %p263_p8 = pnand %p262_p7, %p256_p4 }
  0x5f   :  { %266 = shalt.err (!%p263_p8)
}
  0x60   :  { %s267_s12 = scalar_lea.hbm %s379_s4, 128 }
  0x61   :  { %p268_p9 = scmp.ne.s32.totalorder %s379_s4, %s267_s12  ;;  %p271_p10 = scmp.lt.u32.totalorder %s267_s12, %s379_s4 }
  0x63   :  { %p273_p11 = pnand %p271_p10, %p268_p9 }
  0x65   :  { %276 = shalt.err (!%p273_p11)
}
  0x66   :  { %140 = dma.vmem_to_hbm [thread:$0]  %s138_s25, 128, %s379_s4, [#allocation10]  }
  0x67   :  { %281 = dma.done.wait [#allocation4], 128  }
  0x68   :  { %282 = vsyncadd [#allocation4], 4294967168 }
  0x69   :  { %283 = dma.done.wait [#allocation10], 128  }
  0x6a   :  { %284 = vsyncadd [#allocation10], 4294967168 }
  0x6b   :  { %147 = vsyncpa [#allocation3], 1 }
  0x6c   :  { %148 = vsyncpa [#allocation6], 1 }
  0x6d   :  { %149 = vsyncpa [#allocation4], 1 }
  0x6e   :  { %150 = vsyncpa [#allocation10], 1 }

</bundles_post_ra>
